<compile_context>
chip_gen: v5e
topology: v5e:2x2
jax: 0.10.0
libtpu: 0.0.40
codegen_flags: <defaults>
</compile_context>

<pallas_src>
import jax
import jax.numpy as jnp
from jax.experimental import pallas as pl
from jax.experimental.pallas import tpu as pltpu


def _round_up(x, m):
    return (x + m - 1) // m * m


def mlp_kernel(x_ref, w1_ref, b1_ref, w2_ref, b2_ref, w3_ref, b3_ref,
               u1_ref, u2_ref, o_ref):
    x = x_ref[...]

    # ---- L1 + ReLU + dropout(p=0.5) ----
    h = jnp.dot(x, w1_ref[...], preferred_element_type=jnp.float32) + b1_ref[...]
    h = jnp.maximum(h, 0.0)
    # keep prob = 0.5; the survivor scale 2.0 is pre-folded into w2 on host.
    h = jnp.where(u1_ref[...] >= 0.5, h, 0.0)

    # ---- L2 + ReLU + dropout(p=0.5) ----
    h = jnp.dot(h, w2_ref[...], preferred_element_type=jnp.float32) + b2_ref[...]
    h = jnp.maximum(h, 0.0)
    # survivor scale 2.0 pre-folded into w3 on host.
    h = jnp.where(u2_ref[...] >= 0.5, h, 0.0)

    # ---- L3 (no activation) ----
    out = jnp.dot(h, w3_ref[...], preferred_element_type=jnp.float32) + b3_ref[...]
    o_ref[...] = out.astype(o_ref.dtype)


def nn_forward(x, w1, b1, w2, b2, w3, b3, key, *, block_rows=256):
    """x: [B, F]; wi: [F, F] (stored [in, out]); bi: [1, F]."""
    B, F = x.shape
    assert w1.shape == (F, F) and w2.shape == (F, F) and w3.shape == (F, F)

    # Lane-dense padding of the feature dim (multiple of 128) and row tiling.
    Fp = _round_up(F, 128)
    tm = block_rows if B >= block_rows else _round_up(B, 8)
    Bp = _round_up(B, tm)

    def pad_x(a):
        return jnp.zeros((Bp, Fp), jnp.float32).at[:B, :F].set(a)

    def pad_w(w):
        return jnp.zeros((Fp, Fp), jnp.float32).at[:F, :F].set(w)

    def pad_b(b):
        return jnp.zeros((1, Fp), jnp.float32).at[:, :F].set(b)

    xp = pad_x(x)
    # Fold the inverted-dropout 1/(1-p) = 2.0 scale into the *next* layer's
    # weights (not biases): dropped_h @ (2*W) == (2*dropped_h) @ W.
    w1p, b1p = pad_w(w1), pad_b(b1)
    w2p, b2p = pad_w(2.0 * w2), pad_b(b2)
    w3p, b3p = pad_w(2.0 * w3), pad_b(b3)

    # Fresh dropout uniforms per forward pass (F.dropout defaults to training).
    k1, k2 = jax.random.split(key)
    u1 = jax.random.uniform(k1, (Bp, Fp), jnp.float32)
    u2 = jax.random.uniform(k2, (Bp, Fp), jnp.float32)

    grid = (Bp // tm,)
    row_spec = pl.BlockSpec((tm, Fp), lambda i: (i, 0))      # x, masks, out
    w_spec = pl.BlockSpec((Fp, Fp), lambda i: (0, 0))        # weights: resident
    b_spec = pl.BlockSpec((1, Fp), lambda i: (0, 0))         # biases:  resident

    out = pl.pallas_call(
        mlp_kernel,
        out_shape=jax.ShapeDtypeStruct((Bp, Fp), jnp.float32),
        grid=grid,
        in_specs=[row_spec,
                  w_spec, b_spec,
                  w_spec, b_spec,
                  w_spec, b_spec,
                  row_spec, row_spec],
        out_specs=row_spec,
        compiler_params=pltpu.CompilerParams(
            dimension_semantics=("parallel",)),
    )(xp, w1p, b1p, w2p, b2p, w3p, b3p, u1, u2)

    return out[:B, :F]


def init_linear(key, in_f, out_f):
    # Mimic torch.nn.Linear default init: U(-1/sqrt(in), 1/sqrt(in)).
    kw, kb = jax.random.split(key)
    bound = 1.0 / jnp.sqrt(jnp.float32(in_f))
    # Stored as [in, out] (transpose of torch's [out, in]) for x @ W.
    w = jax.random.uniform(kw, (in_f, out_f), jnp.float32, -bound, bound)
    b = jax.random.uniform(kb, (1, out_f), jnp.float32, -bound, bound)
    return w, b


if __name__ == "__main__":
    input_size = 32   # inputSize == outputSize is required by the forward pass
    output_size = 32
    batch = 8

    root = jax.random.PRNGKey(0)
    kx, k1, k2, k3, kdrop = jax.random.split(root, 5)

    x = jax.random.normal(kx, (batch, input_size), jnp.float32)
    w1, b1 = init_linear(k1, input_size, output_size)
    w2, b2 = init_linear(k2, input_size, output_size)
    w3, b3 = init_linear(k3, input_size, output_size)

    out = nn_forward(x, w1, b1, w2, b2, w3, b3, kdrop)
    jax.block_until_ready(out)
    assert out.shape == (batch, output_size)
    assert out.dtype == jnp.float32
    assert bool(jnp.all(jnp.isfinite(out)))
    print("KERNEL_OK")
</pallas_src>

<mosaic_0001>
module attributes {stable_mosaic.version = 11 : i64} {
  func.func @mlp_kernel(%arg0: i32, %arg1: memref<8x128xf32, #tpu.memory_space<vmem>>, %arg2: memref<128x128xf32, #tpu.memory_space<vmem>>, %arg3: memref<1x128xf32, #tpu.memory_space<vmem>>, %arg4: memref<128x128xf32, #tpu.memory_space<vmem>>, %arg5: memref<1x128xf32, #tpu.memory_space<vmem>>, %arg6: memref<128x128xf32, #tpu.memory_space<vmem>>, %arg7: memref<1x128xf32, #tpu.memory_space<vmem>>, %arg8: memref<8x128xf32, #tpu.memory_space<vmem>>, %arg9: memref<8x128xf32, #tpu.memory_space<vmem>>, %arg10: memref<8x128xf32, #tpu.memory_space<vmem>>) attributes {dimension_semantics = [#tpu.dimension_semantics<parallel>], iteration_bounds = array<i64: 1>, scalar_prefetch = 0 : i64, scratch_operands = 0 : i64, tpu.core_type = #tpu.core_type<tc>, window_params = [{transform_indices = @transform_0, window_bounds = array<i64: 8, 128>}, {pipeline_mode = #tpu.pipeline_mode<synchronous>, transform_indices = @transform_1, window_bounds = array<i64: 128, 128>}, {pipeline_mode = #tpu.pipeline_mode<synchronous>, transform_indices = @transform_2, window_bounds = array<i64: 1, 128>}, {pipeline_mode = #tpu.pipeline_mode<synchronous>, transform_indices = @transform_3, window_bounds = array<i64: 128, 128>}, {pipeline_mode = #tpu.pipeline_mode<synchronous>, transform_indices = @transform_4, window_bounds = array<i64: 1, 128>}, {pipeline_mode = #tpu.pipeline_mode<synchronous>, transform_indices = @transform_5, window_bounds = array<i64: 128, 128>}, {pipeline_mode = #tpu.pipeline_mode<synchronous>, transform_indices = @transform_6, window_bounds = array<i64: 1, 128>}, {transform_indices = @transform_7, window_bounds = array<i64: 8, 128>}, {transform_indices = @transform_8, window_bounds = array<i64: 8, 128>}, {transform_indices = @transform_9, window_bounds = array<i64: 8, 128>}]} {
    %c0 = arith.constant 0 : index
    %c0_0 = arith.constant 0 : index
    %0 = vector.load %arg1[%c0, %c0_0] : memref<8x128xf32, #tpu.memory_space<vmem>>, vector<8x128xf32>
    %c0_1 = arith.constant 0 : index
    %c0_2 = arith.constant 0 : index
    %1 = vector.load %arg2[%c0_1, %c0_2] : memref<128x128xf32, #tpu.memory_space<vmem>>, vector<128x128xf32>
    %cst = arith.constant dense<0.000000e+00> : vector<8x128xf32>
    %2 = tpu.matmul %0, %1, %cst {dimension_numbers = #tpu.dot_dimension_numbers<[1], [0], [0], [1], [0, 0, 1, 1], [], []>} : vector<8x128xf32>, vector<128x128xf32>, vector<8x128xf32> -> vector<8x128xf32>
    %c0_3 = arith.constant 0 : index
    %c0_4 = arith.constant 0 : index
    %3 = vector.load %arg3[%c0_3, %c0_4] : memref<1x128xf32, #tpu.memory_space<vmem>>, vector<1x128xf32>
    %4 = vector.broadcast %3 : vector<1x128xf32> to vector<8x128xf32>
    %5 = arith.addf %2, %4 : vector<8x128xf32>
    %cst_5 = arith.constant 0.000000e+00 : f32
    %6 = vector.broadcast %cst_5 : f32 to vector<8x128xf32>
    %7 = arith.maximumf %5, %6 : vector<8x128xf32>
    %c0_6 = arith.constant 0 : index
    %c0_7 = arith.constant 0 : index
    %8 = vector.load %arg8[%c0_6, %c0_7] : memref<8x128xf32, #tpu.memory_space<vmem>>, vector<8x128xf32>
    %cst_8 = arith.constant 5.000000e-01 : f32
    %9 = vector.broadcast %cst_8 : f32 to vector<8x128xf32>
    %10 = arith.cmpf oge, %8, %9 : vector<8x128xf32>
    %cst_9 = arith.constant 0.000000e+00 : f32
    %11 = vector.broadcast %cst_9 : f32 to vector<8x128xf32>
    %12 = arith.select %10, %7, %11 : vector<8x128xi1>, vector<8x128xf32>
    %c0_10 = arith.constant 0 : index
    %c0_11 = arith.constant 0 : index
    %13 = vector.load %arg4[%c0_10, %c0_11] : memref<128x128xf32, #tpu.memory_space<vmem>>, vector<128x128xf32>
    %cst_12 = arith.constant dense<0.000000e+00> : vector<8x128xf32>
    %14 = tpu.matmul %12, %13, %cst_12 {dimension_numbers = #tpu.dot_dimension_numbers<[1], [0], [0], [1], [0, 0, 1, 1], [], []>} : vector<8x128xf32>, vector<128x128xf32>, vector<8x128xf32> -> vector<8x128xf32>
    %c0_13 = arith.constant 0 : index
    %c0_14 = arith.constant 0 : index
    %15 = vector.load %arg5[%c0_13, %c0_14] : memref<1x128xf32, #tpu.memory_space<vmem>>, vector<1x128xf32>
    %16 = vector.broadcast %15 : vector<1x128xf32> to vector<8x128xf32>
    %17 = arith.addf %14, %16 : vector<8x128xf32>
    %cst_15 = arith.constant 0.000000e+00 : f32
    %18 = vector.broadcast %cst_15 : f32 to vector<8x128xf32>
    %19 = arith.maximumf %17, %18 : vector<8x128xf32>
    %c0_16 = arith.constant 0 : index
    %c0_17 = arith.constant 0 : index
    %20 = vector.load %arg9[%c0_16, %c0_17] : memref<8x128xf32, #tpu.memory_space<vmem>>, vector<8x128xf32>
    %cst_18 = arith.constant 5.000000e-01 : f32
    %21 = vector.broadcast %cst_18 : f32 to vector<8x128xf32>
    %22 = arith.cmpf oge, %20, %21 : vector<8x128xf32>
    %cst_19 = arith.constant 0.000000e+00 : f32
    %23 = vector.broadcast %cst_19 : f32 to vector<8x128xf32>
    %24 = arith.select %22, %19, %23 : vector<8x128xi1>, vector<8x128xf32>
    %c0_20 = arith.constant 0 : index
    %c0_21 = arith.constant 0 : index
    %25 = vector.load %arg6[%c0_20, %c0_21] : memref<128x128xf32, #tpu.memory_space<vmem>>, vector<128x128xf32>
    %cst_22 = arith.constant dense<0.000000e+00> : vector<8x128xf32>
    %26 = tpu.matmul %24, %25, %cst_22 {dimension_numbers = #tpu.dot_dimension_numbers<[1], [0], [0], [1], [0, 0, 1, 1], [], []>} : vector<8x128xf32>, vector<128x128xf32>, vector<8x128xf32> -> vector<8x128xf32>
    %c0_23 = arith.constant 0 : index
    %c0_24 = arith.constant 0 : index
    %27 = vector.load %arg7[%c0_23, %c0_24] : memref<1x128xf32, #tpu.memory_space<vmem>>, vector<1x128xf32>
    %28 = vector.broadcast %27 : vector<1x128xf32> to vector<8x128xf32>
    %29 = arith.addf %26, %28 : vector<8x128xf32>
    %c0_25 = arith.constant 0 : index
    %c0_26 = arith.constant 0 : index
    %30 = vector.load %arg10[%c0_25, %c0_26] : memref<8x128xf32, #tpu.memory_space<vmem>>, vector<8x128xf32>
    tpu.vector_store %arg10[%c0_25, %c0_26], %29 {strides = array<i32>} : memref<8x128xf32, #tpu.memory_space<vmem>>, vector<8x128xf32>,
    return
  }
  func.func @transform_0(%arg0: i32) -> (i32, i32) {
    %c0_i32 = arith.constant 0 : i32
    %c0_i32_0 = arith.constant 0 : i32
    return %arg0, %c0_i32 : i32, i32
  }
  func.func @transform_1(%arg0: i32) -> (i32, i32) {
    %c0_i32 = arith.constant 0 : i32
    %c0_i32_0 = arith.constant 0 : i32
    %c0_i32_1 = arith.constant 0 : i32
    return %c0_i32, %c0_i32_0 : i32, i32
  }
  func.func @transform_2(%arg0: i32) -> (i32, i32) {
    %c0_i32 = arith.constant 0 : i32
    %c0_i32_0 = arith.constant 0 : i32
    %c0_i32_1 = arith.constant 0 : i32
    return %c0_i32, %c0_i32_0 : i32, i32
  }
  func.func @transform_3(%arg0: i32) -> (i32, i32) {
    %c0_i32 = arith.constant 0 : i32
    %c0_i32_0 = arith.constant 0 : i32
    %c0_i32_1 = arith.constant 0 : i32
    return %c0_i32, %c0_i32_0 : i32, i32
  }
  func.func @transform_4(%arg0: i32) -> (i32, i32) {
    %c0_i32 = arith.constant 0 : i32
    %c0_i32_0 = arith.constant 0 : i32
    %c0_i32_1 = arith.constant 0 : i32
    return %c0_i32, %c0_i32_0 : i32, i32
  }
  func.func @transform_5(%arg0: i32) -> (i32, i32) {
    %c0_i32 = arith.constant 0 : i32
    %c0_i32_0 = arith.constant 0 : i32
    %c0_i32_1 = arith.constant 0 : i32
    return %c0_i32, %c0_i32_0 : i32, i32
  }
  func.func @transform_6(%arg0: i32) -> (i32, i32) {
    %c0_i32 = arith.constant 0 : i32
    %c0_i32_0 = arith.constant 0 : i32
    %c0_i32_1 = arith.constant 0 : i32
    return %c0_i32, %c0_i32_0 : i32, i32
  }
  func.func @transform_7(%arg0: i32) -> (i32, i32) {
    %c0_i32 = arith.constant 0 : i32
    %c0_i32_0 = arith.constant 0 : i32
    return %arg0, %c0_i32 : i32, i32
  }
  func.func @transform_8(%arg0: i32) -> (i32, i32) {
    %c0_i32 = arith.constant 0 : i32
    %c0_i32_0 = arith.constant 0 : i32
    return %arg0, %c0_i32 : i32, i32
  }
  func.func @transform_9(%arg0: i32) -> (i32, i32) {
    %c0_i32 = arith.constant 0 : i32
    %c0_i32_0 = arith.constant 0 : i32
    return %arg0, %c0_i32 : i32, i32
  }
}

</mosaic_0001>

<bundles_post_ra>
// kernel: tpu_custom_call.1
= control target key start
LH: loop header
LB: loop body
LE: loop exit
PB: predicated region body
PF: predicated region fallthrough
CT: control target
= control target key end

     0   :  { %14 = vsyncpa [#allocation3], 0  ;;  %s552_s0 = inlined_call_operand.hbm [shape: f32[8,128], index: 0, kind: input, shape index: {}]   ;;  %s553_s1 = inlined_call_operand.hbm [shape: f32[128,128], index: 1, kind: input, shape index: {}]   ;;  %s554_s2 = inlined_call_operand.vmem [shape: f32[1,128], index: 2, kind: input, shape index: {}]   ;;  %s555_s3 = inlined_call_operand.hbm [shape: f32[128,128], index: 3, kind: input, shape index: {}]   ;;  %s556_s4 = inlined_call_operand.vmem [shape: f32[1,128], index: 4, kind: input, shape index: {}]   ;;  %s557_s5 = inlined_call_operand.hbm [shape: f32[128,128], index: 5, kind: input, shape index: {}]   ;;  %s558_s6 = inlined_call_operand.vmem [shape: f32[1,128], index: 6, kind: input, shape index: {}]   ;;  %s559_s7 = inlined_call_operand.hbm [shape: f32[8,128], index: 7, kind: input, shape index: {}]   ;;  %s560_s8 = inlined_call_operand.hbm [shape: f32[8,128], index: 8, kind: input, shape index: {}]   ;;  %s561_s9 = inlined_call_operand.hbm [shape: f32[8,128], index: 9, kind: output, shape index: {}]  }
   0x1   :  { %15 = vsyncpa [#allocation6], 0 }
   0x2   :  { %16 = vsyncpa [#allocation9], 0 }
   0x3   :  { %17 = vsyncpa [#allocation12], 0  ;;  %s34_s11 = sshll.u32 %s553_s1, 4  ;;  %s35_s11 = int_to_ptr.hbm [resolvable:$true] %s34_s11 }
   0x4   :  { %18 = vsyncpa [#allocation4], 0  ;;  %s463_s12 = smov [#allocation5]   ;;  %s64_s16 = sshll.u32 %s557_s5, 4  ;;  %s65_s16 = int_to_ptr.hbm [resolvable:$true] %s64_s16 }
   0x5   :  { %s36_s13 = sshll.u32 %s463_s12, 4  ;;  %s464_s17 = smov 128   ;;  %s37_s13 = int_to_ptr.vmem [resolvable:$true] %s36_s13 }
   0x6   :  { %s465_s18 = smov 8   ;;  %s466_s19 = smov [#allocation8]  }
   0x7   :  { %42 = dma.hbm_to_vmem [thread:$0]  %s35_s11, 2048, %s37_s13, [#allocation6], %s464_s17, %s464_s17, %s465_s18  }
   0x8   :  { %s66_s20 = sshll.u32 %s466_s19, 4  ;;  %s24_s23 = sshll.u32 %s552_s0, 4  ;;  %s67_s20 = int_to_ptr.vmem [resolvable:$true] %s66_s20  ;;  %s25_s23 = int_to_ptr.hbm [resolvable:$true] %s24_s23 }
   0x9   :  { %72 = dma.hbm_to_vmem [thread:$0]  %s65_s16, 2048, %s67_s20, [#allocation9], %s464_s17, %s464_s17, %s465_s18  }
   0xa   :  { %s49_s25 = sshll.u32 %s555_s3, 4  ;;  %s467_s26 = smov [#allocation2]   ;;  %s50_s25 = int_to_ptr.hbm [resolvable:$true] %s49_s25 }
   0xb   :  { %s26_s27 = sshll.u32 %s467_s26, 4  ;;  %s468_s5 = smov [#allocation7]   ;;  %s27_s27 = int_to_ptr.vmem [resolvable:$true] %s26_s27 }
   0xc   :  { %29 = dma.hbm_to_vmem [thread:$0]  %s25_s23, 128, %s27_s27, [#allocation3]  }
   0xd   :  { %s51_s28 = sshll.u32 %s468_s5, 4  ;;  %s80_s10 = sshll.u32 %s559_s7, 4  ;;  %s52_s28 = int_to_ptr.vmem [resolvable:$true] %s51_s28  ;;  %s81_s10 = int_to_ptr.hbm [resolvable:$true] %s80_s10 }
   0xe   :  { %57 = dma.hbm_to_vmem [thread:$0]  %s50_s25, 2048, %s52_s28, [#allocation6], %s464_s17, %s464_s17, %s465_s18  }
   0xf   :  { %s91_s12 = sshll.u32 %s560_s8, 4  ;;  %s469_s13 = smov [#allocation10]   ;;  %s92_s12 = int_to_ptr.hbm [resolvable:$true] %s91_s12 }
  0x10   :  { %s82_s3 = sshll.u32 %s469_s13, 4  ;;  %s470_s14 = smov [#allocation11]   ;;  %s83_s3 = int_to_ptr.vmem [resolvable:$true] %s82_s3 }
  0x11   :  { %85 = dma.hbm_to_vmem [thread:$0]  %s81_s10, 128, %s83_s3, [#allocation9]  }
  0x12   :  { %s93_s15 = sshll.u32 %s470_s14, 4  ;;  %s94_s15 = int_to_ptr.vmem [resolvable:$true] %s93_s15 }
  0x13   :  { %96 = dma.hbm_to_vmem [thread:$0]  %s92_s12, 128, %s94_s15, [#allocation12]  }
  0x14   :  { %453 = dma.done.wait [#allocation3], 128  }
  0x15   :  { %454 = vsyncadd [#allocation3], 4294967168 }
  0x16   :  { %455 = dma.done.wait [#allocation6], 4096  }
  0x17   :  { %456 = vsyncadd [#allocation6], 4294963200 }
  0x18   :  { %457 = dma.done.wait [#allocation9], 2176  }
  0x19   :  { %458 = vsyncadd [#allocation9], 4294965120 }
  0x1a   :  { %459 = dma.done.wait [#allocation12], 128  }
  0x1b   :  { %460 = vsyncadd [#allocation12], 4294967168  ;;  %v137_v0 = vld [vmem:[#allocation5 + $0x78] sm:$0xff]  ;;  %v136_v1 = vld [vmem:[#allocation5 + $0x70] sm:$0xff]  ;;  %s471_s19 = smov [#allocation13]   ;;  %s258_s23 = sshll.u32 %s561_s9, 4  ;;  %s259_s23 = int_to_ptr.hbm [resolvable:$true] %s258_s23 }
  0x1c   :  { %142 = vmatpush.msra.mxu0 %v137_v0  ;;  %v135_v2 = vld [vmem:[#allocation5 + $0x68] sm:$0xff]  ;;  %v134_v3 = vld [vmem:[#allocation5 + $0x60] sm:$0xff]  ;;  %v181_v4 = vld [vmem:[#allocation7 + $0x78] sm:$0xff]  ;;  %s256_s20 = sshll.u32 %s471_s19, 4  ;;  %s257_s20 = int_to_ptr.vmem [resolvable:$true] %s256_s20 }
  0x1d   :  { %v133_v5 = vld [vmem:[#allocation5 + $0x58] sm:$0xff]  ;;  %186 = vmatpush.msra.mxu1 %v181_v4  ;;  %v180_v6 = vld [vmem:[#allocation7 + $0x70] sm:$0xff]  ;;  %v179_v7 = vld [vmem:[#allocation7 + $0x68] sm:$0xff] }
  0x1e   :  { %143 = vmatpush.msra.mxu0 %v136_v1  ;;  %v132_v8 = vld [vmem:[#allocation5 + $0x50] sm:$0xff]  ;;  %v178_v9 = vld [vmem:[#allocation7 + $0x60] sm:$0xff]  ;;  %v131_v10 = vld [vmem:[#allocation5 + $0x48] sm:$0xff] }
  0x1f   :  { %187 = vmatpush.msra.mxu1 %v180_v6  ;;  %v177_v11 = vld [vmem:[#allocation7 + $0x58] sm:$0xff]  ;;  %v130_v12 = vld [vmem:[#allocation5 + $0x40] sm:$0xff]  ;;  %v176_v13 = vld [vmem:[#allocation7 + $0x50] sm:$0xff] }
  0x20   :  { %144 = vmatpush.msra.mxu0 %v135_v2  ;;  %v129_v14 = vld [vmem:[#allocation5 + $0x38] sm:$0xff]  ;;  %v175_v15 = vld [vmem:[#allocation7 + $0x48] sm:$0xff]  ;;  %v128_v16 = vld [vmem:[#allocation5 + $0x30] sm:$0xff] }
  0x21   :  { %188 = vmatpush.msra.mxu1 %v179_v7  ;;  %v174_v17 = vld [vmem:[#allocation7 + $0x40] sm:$0xff]  ;;  %v127_v18 = vld [vmem:[#allocation5 + $0x28] sm:$0xff]  ;;  %v173_v19 = vld [vmem:[#allocation7 + $0x38] sm:$0xff] }
  0x22   :  { %145 = vmatpush.msra.mxu0 %v134_v3  ;;  %v126_v20 = vld [vmem:[#allocation5 + $0x20] sm:$0xff]  ;;  %v172_v21 = vld [vmem:[#allocation7 + $0x30] sm:$0xff]  ;;  %v125_v22 = vld [vmem:[#allocation5 + $0x18] sm:$0xff] }
  0x23   :  { %189 = vmatpush.msra.mxu1 %v178_v9  ;;  %v171_v23 = vld [vmem:[#allocation7 + $0x28] sm:$0xff]  ;;  %v124_v24 = vld [vmem:[#allocation5 + $0x10] sm:$0xff]  ;;  %v170_v25 = vld [vmem:[#allocation7 + $0x20] sm:$0xff] }
  0x24   :  { %146 = vmatpush.msra.mxu0 %v133_v5  ;;  %v123_v26 = vld [vmem:[#allocation5 + $0x8] sm:$0xff]  ;;  %v169_v27 = vld [vmem:[#allocation7 + $0x18] sm:$0xff]  ;;  %v122_v28 = vld [vmem:[#allocation5] sm:$0xff] }
  0x25   :  { %190 = vmatpush.msra.mxu1 %v177_v11  ;;  %v121_v29 = vld [vmem:[#allocation2] sm:$0xff]  ;;  %v168_v30 = vld [vmem:[#allocation7 + $0x10] sm:$0xff]  ;;  %v167_v31 = vld [vmem:[#allocation7 + $0x8] sm:$0xff] }
  0x26   :  { %147 = vmatpush.msra.mxu0 %v132_v8  ;;  %v166_v32 = vld [vmem:[#allocation7] sm:$0xff]  ;;  %v225_v33 = vld [vmem:[#allocation8 + $0x78] sm:$0xff]  ;;  %v224_v34 = vld [vmem:[#allocation8 + $0x70] sm:$0xff] }
  0x27   :  { %191 = vmatpush.msra.mxu1 %v176_v13  ;;  %230 = vmatpush.msra.mxu2 %v225_v33  ;;  %v223_v35 = vld [vmem:[#allocation8 + $0x68] sm:$0xff]  ;;  %v222_v36 = vld [vmem:[#allocation8 + $0x60] sm:$0xff]  ;;  %v221_v37 = vld [vmem:[#allocation8 + $0x58] sm:$0xff] }
  0x28   :  { %148 = vmatpush.msra.mxu0 %v131_v10  ;;  %v220_v38 = vld [vmem:[#allocation8 + $0x50] sm:$0xff]  ;;  %v219_v39 = vld [vmem:[#allocation8 + $0x48] sm:$0xff]  ;;  %v218_v40 = vld [vmem:[#allocation8 + $0x40] sm:$0xff] }
  0x29   :  { %192 = vmatpush.msra.mxu1 %v175_v15  ;;  %231 = vmatpush.msra.mxu2 %v224_v34  ;;  %v217_v41 = vld [vmem:[#allocation8 + $0x38] sm:$0xff]  ;;  %v216_v42 = vld [vmem:[#allocation8 + $0x30] sm:$0xff]  ;;  %v215_v43 = vld [vmem:[#allocation8 + $0x28] sm:$0xff] }
  0x2a   :  { %149 = vmatpush.msra.mxu0 %v130_v12  ;;  %v214_v44 = vld [vmem:[#allocation8 + $0x20] sm:$0xff]  ;;  %v213_v45 = vld [vmem:[#allocation8 + $0x18] sm:$0xff]  ;;  %v212_v51 = vld [vmem:[#allocation8 + $0x10] sm:$0xff] }
  0x2b   :  { %193 = vmatpush.msra.mxu1 %v174_v17  ;;  %232 = vmatpush.msra.mxu2 %v223_v35  ;;  %v282_v46 = vld [vmem:[%s554_s2] ss:$0 sm:$0xff]  ;;  %v163_v47 = vld [vmem:[#allocation10] sm:$0xff]  ;;  %v211_v52 = vld [vmem:[#allocation8 + $0x8] sm:$0xff] }
  0x2c   :  { %150 = vmatpush.msra.mxu0 %v129_v14  ;;  %vm164_vm0 = vcmp.ge.f32.partialorder %v163_v47, 0.5  ;;  %v210_v53 = vld [vmem:[#allocation8] sm:$0xff]  ;;  %v283_v54 = vld [vmem:[%s556_s4] ss:$0 sm:$0xff]  ;;  %v207_v55 = vld [vmem:[#allocation11] sm:$0xff] }
  0x2d   :  { %194 = vmatpush.msra.mxu1 %v173_v19  ;;  %233 = vmatpush.msra.mxu2 %v222_v36  ;;  %vm208_vm1 = vcmp.ge.f32.partialorder %v207_v55, 0.5  ;;  %v284_v59 = vld [vmem:[%s558_s6] ss:$0 sm:$0xff] }
  0x2e   :  { %151 = vmatpush.msra.mxu0 %v128_v16 }
  0x2f   :  { %195 = vmatpush.msra.mxu1 %v172_v21  ;;  %234 = vmatpush.msra.mxu2 %v221_v37 }
  0x30   :  { %152 = vmatpush.msra.mxu0 %v127_v18 }
  0x31   :  { %196 = vmatpush.msra.mxu1 %v171_v23  ;;  %235 = vmatpush.msra.mxu2 %v220_v38 }
  0x32   :  { %153 = vmatpush.msra.mxu0 %v126_v20 }
  0x33   :  { %197 = vmatpush.msra.mxu1 %v170_v25  ;;  %236 = vmatpush.msra.mxu2 %v219_v39 }
  0x34   :  { %154 = vmatpush.msra.mxu0 %v125_v22 }
  0x35   :  { %198 = vmatpush.msra.mxu1 %v169_v27  ;;  %237 = vmatpush.msra.mxu2 %v218_v40 }
  0x36   :  { %155 = vmatpush.msra.mxu0 %v124_v24 }
  0x37   :  { %199 = vmatpush.msra.mxu1 %v168_v30  ;;  %238 = vmatpush.msra.mxu2 %v217_v41 }
  0x38   :  { %156 = vmatpush.msra.mxu0 %v123_v26 }
  0x39   :  { %200 = vmatpush.msra.mxu1 %v167_v31  ;;  %239 = vmatpush.msra.mxu2 %v216_v42 }
  0x3a   :  { %157 = vmatpush.msra.mxu0 %v122_v28 }
  0x3b   :  { %158 = vmatmul.f32.vlgmr.msra.gmra.mxu0 %v121_v29  ;;  %201 = vmatpush.msra.mxu1 %v166_v32 }
  0x3c   :  { %240 = vmatpush.msra.mxu2 %v215_v43 }
  0x3e   :  { %241 = vmatpush.msra.mxu2 %v214_v44 }
  0x40   :  { %242 = vmatpush.msra.mxu2 %v213_v45 }
  0x42   :  { %243 = vmatpush.msra.mxu2 %v212_v51 }
  0x44   :  { %244 = vmatpush.msra.mxu2 %v211_v52 }
  0x46   :  { %245 = vmatpush.msra.mxu2 %v210_v53 }
  0xb8   :  { %v159_v48 = vpop.f32.mrf.mxu0 }
  0xb9   :  { %v160_v49 = vadd.f32 %v282_v46, %v159_v48 }
  0xbb   :  { %v162_v50 = vmax.f32 %v160_v49, 0.0 }
  0xbd   :  { %271 = vmatmul.msk.f32.vlgmr.msra.gmra.mxu1 %vm164_vm0, %v162_v50 }
 0x13a   :  { %v203_v56 = vpop.f32.mrf.mxu1 }
 0x13b   :  { %v204_v57 = vadd.f32 %v283_v54, %v203_v56 }
 0x13d   :  { %v206_v58 = vmax.f32 %v204_v57, 0.0 }
 0x13f   :  { %272 = vmatmul.msk.f32.vlgmr.msra.gmra.mxu2 %vm208_vm1, %v206_v58 }
 0x1c2   :  { %v247_v60 = vpop.f32.mrf.mxu2 }
 0x1c3   :  { %v248_v61 = vadd.f32 %v284_v59, %v247_v60 }
 0x1c5   :  { %250 = vst [vmem:[#allocation13] sm:$0xff] %v248_v61 }
 0x1c6   :  { %261 = dma.vmem_to_hbm [thread:$0]  %s257_s20, 128, %s259_s23, [#allocation4]  }
 0x1c7   :  { %461 = dma.done.wait [#allocation4], 128  }
 0x1c8   :  { %462 = vsyncadd [#allocation4], 4294967168 }
 0x1c9   :  { %266 = vsyncpa [#allocation3], 1 }
 0x1ca   :  { %267 = vsyncpa [#allocation6], 1 }
 0x1cb   :  { %268 = vsyncpa [#allocation9], 1 }
 0x1cc   :  { %269 = vsyncpa [#allocation12], 1 }
 0x1cd   :  { %270 = vsyncpa [#allocation4], 1 }

</bundles_post_ra>
